<compile_context>
chip_gen: v7x
topology: tpu7x:2x2x1
jax: 0.10.0
libtpu: 0.0.40
codegen_flags: <defaults>
</compile_context>

<pallas_src>
import jax
import jax.numpy as jnp
from jax.experimental import pallas as pl
from jax.experimental.pallas import tpu as pltpu


def _power_layer_kernel(x_ref, pm_ref, o_ref):
    # x_ref: (TM, W)   pm_ref: (W, W_out_pad)   o_ref: (TM, W_out_pad)
    x = x_ref[...].astype(jnp.float32)           # keep f32 math (v5e has no bf16 VPU/EUP)
    xs = x * x                                   # power           (VPU)
    pooled = jnp.dot(xs, pm_ref[...],            # window average  (MXU)
                     preferred_element_type=jnp.float32)
    o_ref[...] = jnp.log(pooled).astype(o_ref.dtype)   # log        (EUP)


def _round_up(n: int, m: int) -> int:
    return (n + m - 1) // m * m


def _build_pool_matrix(W: int, w_out: int, w_out_pad: int,
                       length: int, step: int) -> jax.Array:
    """(W, w_out_pad) matrix: column j averages x[j*step : j*step+length].

    Padding columns (j >= w_out) duplicate window 0 so the pooled value is
    strictly positive there (no log(0) in discarded lanes)."""
    col = jnp.arange(w_out_pad)
    col = jnp.minimum(col, w_out - 1)
    starts = col * step                                   # (w_out_pad,)
    row = jnp.arange(W)[:, None]                          # (W, 1)
    in_window = (row >= starts[None, :]) & (row < starts[None, :] + length)
    return jnp.where(in_window, 1.0 / float(length), 0.0).astype(jnp.float32)


def power_layer(x: jax.Array, length: int, step: int) -> jax.Array:
    """Pallas implementation of PowerLayer.forward.

    x: (B, C, H, W) float array (NCHW).
    returns: (B, C, H, W_out) with W_out = (W - length) // step + 1.
    """
    B, C, H, W = x.shape
    w_out = (W - length) // step + 1
    assert w_out >= 1, "window larger than input width"

    # Lane-dense output width (multiple of 128).
    w_out_pad = _round_up(w_out, 128)

    # Flatten (B, C, H) -> rows; tile rows.
    rows = B * C * H
    x2 = x.reshape(rows, W)

    # Row-tile size: multiple of 8, capped so the double-buffered in+out tiles
    # stay around <= 8 MiB (fits v5e's 16 MiB / v7x's 32 MiB scoped defaults).
    budget_bytes = 8 * 1024 * 1024
    per_row_bytes = 2 * (W + w_out_pad) * 4          # double-buffered, f32
    tm_cap = max(8, min(2048, (budget_bytes // per_row_bytes) // 8 * 8))
    rows8 = _round_up(rows, 8)
    tm = min(tm_cap, rows8)
    rows_pad = _round_up(rows8, tm)

    if rows_pad > rows:
        # Pad with ones -> log(mean(1)) = 0 in discarded rows (no -inf noise).
        pad = jnp.ones((rows_pad - rows, W), dtype=x2.dtype)
        x2 = jnp.concatenate([x2, pad], axis=0)

    pool_mat = _build_pool_matrix(W, w_out, w_out_pad, length, step)

    grid = (rows_pad // tm,)
    out = pl.pallas_call(
        _power_layer_kernel,
        out_shape=jax.ShapeDtypeStruct((rows_pad, w_out_pad), x.dtype),
        grid_spec=pltpu.PrefetchScalarGridSpec(
            num_scalar_prefetch=0,
            grid=grid,
            in_specs=[
                # (tm, W): tm multiple of 8; W equals the full array dim.
                pl.BlockSpec((tm, W), lambda i: (i, 0)),
                # Pooling matrix: same block every step (stays resident).
                pl.BlockSpec((W, w_out_pad), lambda i: (0, 0)),
            ],
            out_specs=pl.BlockSpec((tm, w_out_pad), lambda i: (i, 0)),
        ),
        compiler_params=pltpu.CompilerParams(
            dimension_semantics=("parallel",),
            vmem_limit_bytes=32 * 1024 * 1024,
        ),
    )(x2, pool_mat)

    # Drop row/lane padding and restore NCHW layout.
    return out[:rows, :w_out].reshape(B, C, H, w_out)


def power_layer_ref(x: jax.Array, length: int, step: int) -> jax.Array:
    """Pure-JAX reference: torch.log(AvgPool2d((1,length),(1,step))(x**2))."""
    xs = x.astype(jnp.float32) ** 2
    W = x.shape[-1]
    w_out = (W - length) // step + 1
    cols = [
        jnp.mean(xs[..., j * step: j * step + length], axis=-1)
        for j in range(w_out)
    ]
    return jnp.log(jnp.stack(cols, axis=-1)).astype(x.dtype)


if __name__ == "__main__":
    # PowerLayer(dim, length, step): `dim` is unused in forward; no learnable
    # parameters.  Pooling params are (length, step).
    length, step = 4, 2

    key = jax.random.PRNGKey(0)
    B, C, H, W = 2, 4, 16, 16
    x = jax.random.normal(key, (B, C, H, W), dtype=jnp.float32)

    out = power_layer(x, length, step)
    out = jax.block_until_ready(out)

    ref = power_layer_ref(x, length, step)
    assert out.shape == (B, C, H, (W - length) // step + 1)
    assert jnp.allclose(out, ref, atol=1e-5, rtol=1e-5), "mismatch vs reference"

    print("KERNEL_OK")
</pallas_src>

<mosaic_0001>
module attributes {stable_mosaic.version = 11 : i64} {
  func.func @_power_layer_kernel(%arg0: i32, %arg1: memref<128x16xf32, #tpu.memory_space<vmem>>, %arg2: memref<16x128xf32, #tpu.memory_space<vmem>>, %arg3: memref<128x128xf32, #tpu.memory_space<vmem>>) attributes {dimension_semantics = [#tpu.dimension_semantics<parallel>], iteration_bounds = array<i64: 1>, scalar_prefetch = 0 : i64, scratch_operands = 0 : i64, tpu.core_type = #tpu.core_type<tc>, window_params = [{transform_indices = @transform_0, window_bounds = array<i64: 128, 16>}, {pipeline_mode = #tpu.pipeline_mode<synchronous>, transform_indices = @transform_1, window_bounds = array<i64: 16, 128>}, {transform_indices = @transform_2, window_bounds = array<i64: 128, 128>}]} {
    %c0 = arith.constant 0 : index
    %c0_0 = arith.constant 0 : index
    %0 = vector.load %arg1[%c0, %c0_0] : memref<128x16xf32, #tpu.memory_space<vmem>>, vector<128x16xf32>
    %1 = arith.mulf %0, %0 : vector<128x16xf32>
    %c0_1 = arith.constant 0 : index
    %c0_2 = arith.constant 0 : index
    %2 = vector.load %arg2[%c0_1, %c0_2] : memref<16x128xf32, #tpu.memory_space<vmem>>, vector<16x128xf32>
    %cst = arith.constant dense<0.000000e+00> : vector<128x128xf32>
    %3 = tpu.matmul %1, %2, %cst {dimension_numbers = #tpu.dot_dimension_numbers<[1], [0], [0], [1], [0, 0, 1, 1], [], []>} : vector<128x16xf32>, vector<16x128xf32>, vector<128x128xf32> -> vector<128x128xf32>
    %4 = math.log %3 : vector<128x128xf32>
    %c0_3 = arith.constant 0 : index
    %c0_4 = arith.constant 0 : index
    %5 = vector.load %arg3[%c0_3, %c0_4] : memref<128x128xf32, #tpu.memory_space<vmem>>, vector<128x128xf32>
    tpu.vector_store %arg3[%c0_3, %c0_4], %4 {strides = array<i32>} : memref<128x128xf32, #tpu.memory_space<vmem>>, vector<128x128xf32>,
    return
  }
  func.func @transform_0(%arg0: i32) -> (i32, i32) {
    %c0_i32 = arith.constant 0 : i32
    %c0_i32_0 = arith.constant 0 : i32
    return %arg0, %c0_i32 : i32, i32
  }
  func.func @transform_1(%arg0: i32) -> (i32, i32) {
    %c0_i32 = arith.constant 0 : i32
    %c0_i32_0 = arith.constant 0 : i32
    %c0_i32_1 = arith.constant 0 : i32
    return %c0_i32, %c0_i32_0 : i32, i32
  }
  func.func @transform_2(%arg0: i32) -> (i32, i32) {
    %c0_i32 = arith.constant 0 : i32
    %c0_i32_0 = arith.constant 0 : i32
    return %arg0, %c0_i32 : i32, i32
  }
}

</mosaic_0001>

<bundles_post_ra>
// kernel: tpu_custom_call.1
= control target key start
LH: loop header
LB: loop body
LE: loop exit
PB: predicated region body
PF: predicated region fallthrough
CT: control target
= control target key end

     0   :  { %vm46_vm0 = vcmask 130048   ;;  %s531_s0 = inlined_call_operand.vmem [shape: f32[128,16], index: 0, kind: input, shape index: {}]   ;;  %s532_s1 = inlined_call_operand.vmem [shape: f32[16,128], index: 1, kind: input, shape index: {}]   ;;  %s533_s2 = inlined_call_operand.hbm [shape: f32[128,128], index: 2, kind: output, shape index: {}]  }
   0x1   :  { %v44_v0 = vld [vmem:[%s532_s1] sm:$0xff]  ;;  %v45_v1 = vld [vmem:[%s532_s1 + $0x8] sm:$0xff]  ;;  %v14_v9 = vld [vmem:[%s531_s0 + $0x10] sm:$0xff] }
   0x2   :  { %v12_v2 = vld [vmem:[%s531_s0] sm:$0xff]  ;;  %v366_v3 = vpack.c.bf16 %v45_v1, %v44_v0  ;;  %v13_v6 = vld [vmem:[%s531_s0 + $0x8] sm:$0xff]  ;;  %v22_v10 = vld [vmem:[%s531_s0 + $0x50] sm:$0xff]  ;;  %v30_v13 = vmul.f32 %v14_v9, %v14_v9 }
   0x3   :  { %v28_v4 = vmul.f32 %v12_v2, %v12_v2  ;;  %v20_v5 = vld [vmem:[%s531_s0 + $0x40] sm:$0xff]  ;;  %v21_v7 = vld [vmem:[%s531_s0 + $0x48] sm:$0xff]  ;;  %v29_v11 = vmul.f32 %v13_v6, %v13_v6  ;;  %v38_v14 = vmul.f32 %v22_v10, %v22_v10  ;;  %v15_v15 = vld [vmem:[%s531_s0 + $0x18] sm:$0xff] }
   0x4   :  { %v36_v8 = vmul.f32 %v20_v5, %v20_v5  ;;  %367 = vmatprep.subr.bf16.mxu0 %v366_v3  ;;  %370 = vmatprep.subr.bf16.mxu1 %v366_v3  ;;  %v37_v12 = vmul.f32 %v21_v7, %v21_v7  ;;  %v23_v16 = vld [vmem:[%s531_s0 + $0x58] sm:$0xff]  ;;  %v16_v17 = vld [vmem:[%s531_s0 + $0x20] sm:$0xff] }
   0x5   :  { %369 = vmatpush3.bf16.msra.mxu0 %v366_v3  ;;  %371 = vmatpush3.bf16.msra.mxu1 %v366_v3  ;;  %v24_v18 = vld [vmem:[%s531_s0 + $0x60] sm:$0xff] }
   0x6   :  { %342 = vmatprep.mubr.msk.f32.mxu0 %vm46_vm0, %v28_v4  ;;  %354 = vmatprep.mubr.msk.f32.mxu1 %vm46_vm0, %v36_v8 }
   0x7   :  { %7 = vsyncpa [#allocation3], 0  ;;  %v31_v19 = vmul.f32 %v15_v15, %v15_v15  ;;  %v39_v20 = vmul.f32 %v23_v16, %v23_v16  ;;  %v32_v21 = vmul.f32 %v16_v17, %v16_v17  ;;  %v40_v22 = vmul.f32 %v24_v18, %v24_v18  ;;  %v17_v23 = vld [vmem:[%s531_s0 + $0x28] sm:$0xff]  ;;  %v18_v25 = vld [vmem:[%s531_s0 + $0x30] sm:$0xff] }
   0x8   :  { %343 = vmatmul.mubr.msk.f32.vlgmr.msra.gmra.mrb[0].mxu0 %vm46_vm0, %v29_v11  ;;  %355 = vmatmul.mubr.msk.f32.vlgmr.msra.gmra.mrb[0].mxu1 %vm46_vm0, %v37_v12  ;;  %v25_v24 = vld [vmem:[%s531_s0 + $0x68] sm:$0xff]  ;;  %v26_v26 = vld [vmem:[%s531_s0 + $0x70] sm:$0xff]  ;;  %v33_v27 = vmul.f32 %v17_v23, %v17_v23  ;;  %v34_v29 = vmul.f32 %v18_v25, %v18_v25  ;;  %v19_v31 = vld [vmem:[%s531_s0 + $0x38] sm:$0xff] }
   0x9   :  { %345 = vmatprep.mubr.msk.f32.mxu0 %vm46_vm0, %v30_v13  ;;  %357 = vmatprep.mubr.msk.f32.mxu1 %vm46_vm0, %v38_v14  ;;  %v41_v28 = vmul.f32 %v25_v24, %v25_v24  ;;  %v42_v30 = vmul.f32 %v26_v26, %v26_v26  ;;  %v27_v32 = vld [vmem:[%s531_s0 + $0x78] sm:$0xff]  ;;  %v35_v33 = vmul.f32 %v19_v31, %v19_v31  ;;  %s431_s0 = smov [#allocation2]  }
   0xa   :  { %v43_v34 = vmul.f32 %v27_v32, %v27_v32  ;;  %s293_s16 = sshll.u32 %s431_s0, 4  ;;  %s294_s16 = int_to_ptr.vmem [resolvable:$true] %s293_s16 }
   0xb   :  { %s407_s17 = scalar_lea.vmem %s294_s16, 2048  ;;  %p412_p1 = scmp.lt.s32.totalorder %s294_s16, %s294_s16 }
   0xc   :  { %346 = vmatmul.mubr.msk.f32.gmra.mrb[2].mxu0 %vm46_vm0, %v31_v19  ;;  %358 = vmatmul.mubr.msk.f32.gmra.mrb[2].mxu1 %vm46_vm0, %v39_v20  ;;  %p408_p0 = scmp.ne.s32.totalorder %s294_s16, %s407_s17  ;;  %p413_p2 = scmp.lt.s32.totalorder %s407_s17, %s407_s17 }
   0xd   :  { %348 = vmatprep.mubr.msk.f32.mxu0 %vm46_vm0, %v32_v21  ;;  %360 = vmatprep.mubr.msk.f32.mxu1 %vm46_vm0, %v40_v22 }
   0xe   :  { %p414_p3 = por %p413_p2, %p412_p1 }
  0x10   :  { %349 = vmatmul.mubr.msk.f32.gmra.mrb[4].mxu0 %vm46_vm0, %v33_v27  ;;  %361 = vmatmul.mubr.msk.f32.gmra.mrb[4].mxu1 %vm46_vm0, %v41_v28  ;;  %p415_p4 = pnand %p414_p3, %p408_p0 }
  0x11   :  { %351 = vmatprep.mubr.msk.f32.mxu0 %vm46_vm0, %v34_v29  ;;  %363 = vmatprep.mubr.msk.f32.mxu1 %vm46_vm0, %v42_v30 }
  0x14   :  { %352 = vmatmul.mubr.msk.f32.gmra.mrb[6].mxu0 %vm46_vm0, %v35_v33  ;;  %364 = vmatmul.mubr.msk.f32.gmra.mrb[6].mxu1 %vm46_vm0, %v43_v34 }
  0xdb   :  { %v344_v35 = vpop.f32.mrb[0].mxu0  ;;  %v356_v36 = vpop.f32.mrb[0].mxu1 }
  0xdc   :  { %375 = vlog2.f32 %v344_v35  ;;  %v161_v37 = vpop.f32.mrb[1].mxu0  ;;  %v201_v38 = vpop.f32.mrb[1].mxu1 }
  0xdd   :  { %377 = vlog2.f32 %v356_v36 }
  0xde   :  { %379 = vlog2.f32 %v161_v37 }
  0xdf   :  { %381 = vlog2.f32 %v201_v38  ;;  %v347_v39 = vpop.f32.mrb[2].mxu0  ;;  %v359_v40 = vpop.f32.mrb[2].mxu1 }
  0xe0   :  { %383 = vlog2.f32 %v347_v39  ;;  %v171_v41 = vpop.f32.mrb[3].mxu0  ;;  %v211_v42 = vpop.f32.mrb[3].mxu1 }
  0xe1   :  { %385 = vlog2.f32 %v359_v40 }
  0xe2   :  { %387 = vlog2.f32 %v171_v41 }
  0xe3   :  { %389 = vlog2.f32 %v211_v42  ;;  %v350_v43 = vpop.f32.mrb[4].mxu0  ;;  %v362_v44 = vpop.f32.mrb[4].mxu1 }
  0xe4   :  { %391 = vlog2.f32 %v350_v43  ;;  %v181_v45 = vpop.f32.mrb[5].mxu0  ;;  %v221_v46 = vpop.f32.mrb[5].mxu1 }
  0xe5   :  { %393 = vlog2.f32 %v362_v44 }
  0xe6   :  { %v376_v47 = vpop.eup %375  ;;  %395 = vlog2.f32 %v181_v45 }
  0xe7   :  { %v378_v48 = vpop.eup %377  ;;  %v243_v49 = vmul.f32 0.6931472, %v376_v47  ;;  %397 = vlog2.f32 %v221_v46  ;;  %v353_v50 = vpop.f32.mrb[6].mxu0 }
  0xe8   :  { %v365_v51 = vpop.f32.mrb[6].mxu1  ;;  %v380_v52 = vpop.eup %379  ;;  %v259_v53 = vmul.f32 0.6931472, %v378_v48  ;;  %399 = vlog2.f32 %v353_v50 }
  0xe9   :  { %v191_v54 = vpop.f32.mrb[7].mxu0  ;;  %v231_v55 = vpop.f32.mrb[7].mxu1  ;;  %273 = vst [vmem:[#allocation2 + $0x8] sm:$0xff] %v243_v49  ;;  %v241_v57 = vmul.f32 0.6931472, %v380_v52  ;;  %401 = vlog2.f32 %v365_v51 }
  0xea   :  { %v382_v56 = vpop.eup %381  ;;  %281 = vst [vmem:[#allocation2 + $0x48] sm:$0xff] %v259_v53  ;;  %403 = vlog2.f32 %v191_v54 }
  0xeb   :  { %v384_v58 = vpop.eup %383  ;;  %v257_v59 = vmul.f32 0.6931472, %v382_v56  ;;  %272 = vst [vmem:[#allocation2] sm:$0xff] %v241_v57  ;;  %405 = vlog2.f32 %v231_v55 }
  0xec   :  { %v386_v60 = vpop.eup %385  ;;  %v247_v61 = vmul.f32 0.6931472, %v384_v58 }
  0xed   :  { %v388_v62 = vpop.eup %387  ;;  %280 = vst [vmem:[#allocation2 + $0x40] sm:$0xff] %v257_v59  ;;  %v263_v63 = vmul.f32 0.6931472, %v386_v60 }
  0xee   :  { %v390_v0 = vpop.eup %389  ;;  %275 = vst [vmem:[#allocation2 + $0x18] sm:$0xff] %v247_v61  ;;  %v245_v1 = vmul.f32 0.6931472, %v388_v62 }
  0xef   :  { %v392_v2 = vpop.eup %391  ;;  %283 = vst [vmem:[#allocation2 + $0x58] sm:$0xff] %v263_v63  ;;  %v261_v3 = vmul.f32 0.6931472, %v390_v0 }
  0xf0   :  { %v394_v4 = vpop.eup %393  ;;  %274 = vst [vmem:[#allocation2 + $0x10] sm:$0xff] %v245_v1  ;;  %v251_v5 = vmul.f32 0.6931472, %v392_v2 }
  0xf1   :  { %v396_v6 = vpop.eup %395  ;;  %282 = vst [vmem:[#allocation2 + $0x50] sm:$0xff] %v261_v3  ;;  %v267_v7 = vmul.f32 0.6931472, %v394_v4 }
  0xf2   :  { %v398_v8 = vpop.eup %397  ;;  %277 = vst [vmem:[#allocation2 + $0x28] sm:$0xff] %v251_v5  ;;  %v249_v9 = vmul.f32 0.6931472, %v396_v6 }
  0xf3   :  { %v400_v10 = vpop.eup %399  ;;  %285 = vst [vmem:[#allocation2 + $0x68] sm:$0xff] %v267_v7  ;;  %v265_v11 = vmul.f32 0.6931472, %v398_v8 }
  0xf4   :  { %v402_v12 = vpop.eup %401  ;;  %276 = vst [vmem:[#allocation2 + $0x20] sm:$0xff] %v249_v9  ;;  %v255_v13 = vmul.f32 0.6931472, %v400_v10 }
  0xf5   :  { %v404_v14 = vpop.eup %403  ;;  %284 = vst [vmem:[#allocation2 + $0x60] sm:$0xff] %v265_v11  ;;  %v271_v15 = vmul.f32 0.6931472, %v402_v12 }
  0xf6   :  { %v406_v16 = vpop.eup %405  ;;  %279 = vst [vmem:[#allocation2 + $0x38] sm:$0xff] %v255_v13  ;;  %v253_v17 = vmul.f32 0.6931472, %v404_v14 }
  0xf7   :  { %287 = vst [vmem:[#allocation2 + $0x78] sm:$0xff] %v271_v15  ;;  %v269_v18 = vmul.f32 0.6931472, %v406_v16 }
  0xf8   :  { %278 = vst [vmem:[#allocation2 + $0x30] sm:$0xff] %v253_v17 }
  0xf9   :  { %286 = vst [vmem:[#allocation2 + $0x70] sm:$0xff] %v269_v18 }
  0xfa   :  { %418 = shalt.err (!%p415_p4)
}
  0xfb   :  { %s419_s20 = scalar_lea.hbm %s533_s2, 2048 }
  0xfc   :  { %p420_p5 = scmp.ne.s32.totalorder %s533_s2, %s419_s20  ;;  %p423_p6 = scmp.lt.u32.totalorder %s419_s20, %s533_s2 }
  0xfe   :  { %p425_p7 = pnand %p423_p6, %p420_p5 }
 0x100   :  { %428 = shalt.err (!%p425_p7)
}
 0x101   :  { %s432_s24 = smov 128   ;;  %s433_s25 = smov 8  }
 0x102   :  { %299 = dma.vmem_to_hbm [thread:$0]  %s294_s16, 2048, %s533_s2, [#allocation3], %s432_s24, %s432_s24, %s433_s25  }
 0x103   :  { %429 = dma.done.wait [#allocation3], 2048  }
 0x104   :  { %430 = vsyncadd [#allocation3], 4294965248 }
 0x105   :  { %303 = vsyncpa [#allocation3], 1 }

</bundles_post_ra>
